<compile_context>
chip_gen: v7x
topology: tpu7x:2x2x1
jax: 0.10.0
libtpu: 0.0.40
codegen_flags: <defaults>
</compile_context>

<pallas_src>
import math

import jax
import jax.numpy as jnp
from jax import lax
from jax.experimental import pallas as pl
from jax.experimental.pallas import tpu as pltpu

# Module hyper-parameters (PyTorch __init__ defaults).
OMEGA = 14.0
THETA = 0.5
EPSILON = 1.0
ALPHA = 2.1

LANES = 128
_LOG_THETA_OVER_EPS = math.log(THETA / EPSILON)   # log(0.5), compile-time const
_LOG_OMEGA = math.log(OMEGA)
# A = omega*(1/(1+p))*exp_a*(theta/eps)**(exp_a-1)*(1/eps)
#   = (omega/theta)*exp_a*p/(1+p)  with p=(theta/eps)**exp_a; eps cancels exactly.
_A_SCALE = OMEGA / THETA


def _fast_recip(x):
    """Approx EUP reciprocal + one Newton-Raphson step (f32-accurate; VPU has slack)."""
    r = pl.reciprocal(x, approx=True)
    return r * (2.0 - x * r)


def _default_n_cores():
    """2 accumulator shards (one per TensorCore) on multi-TC chips; 1 on v5e/v6e."""
    try:
        kind = jax.devices()[0].device_kind.lower()
    except Exception:
        return 2
    for tag in ("v5e", "v5 lite", "v5litepod", "v6e", "v6 lite"):
        if tag in kind:
            return 1
    return 2


def adaptive_wing_loss(pred, target, *, n_cores=None, max_tile_rows=1024):
    """Mean Adaptive Wing loss over all elements of pred/target (any shape)."""
    assert pred.shape == target.shape
    total = int(pred.size)
    if n_cores is None:
        n_cores = _default_n_cores()

    # Lane-dense (rows, 128) view.  reshape(-1) -> (rows, 128) is a pure bitcast
    # (no HBM copy) whenever total is a multiple of 128, which is the normal
    # BxNxHxH heatmap case.  The ragged grid tail is masked in-kernel instead of
    # host-side zero padding.
    p_flat = pred.reshape(-1)
    t_flat = target.reshape(-1)
    rem = total % LANES
    if rem:
        # TODO(synk): rare non-lane-multiple path still pays one padded copy of
        # each input; padded zeros contribute exactly 0 loss.
        p_flat = jnp.pad(p_flat, (0, LANES - rem))
        t_flat = jnp.pad(t_flat, (0, LANES - rem))
    rows = p_flat.size // LANES

    # Tile size: HBM roofline saturates by ~512-1024 rows; small blocks keep
    # 2 inputs x 2 pipeline buffers + block-sized f32 temporaries tiny.
    # Multiple of 16 so bf16 inputs (sublane-packed) are also legal.
    tile_rows = min(max_tile_rows, -(-rows // n_cores))
    tile_rows = max(16, ((tile_rows + 15) // 16) * 16)
    n_blocks = -(-rows // tile_rows)          # real data blocks
    n_tiles = -(-n_blocks // n_cores)         # per-core serial tiles (grid axis 1)

    p2 = p_flat.reshape(rows, LANES)
    t2 = t_flat.reshape(rows, LANES)

    def idx_map(c, t):
        # Clamp so trailing "duplicate" grid points (when n_blocks doesn't split
        # evenly across cores) re-fetch the last real block; the kernel masks
        # their contribution to zero.  Every DMA start stays in bounds.
        return (jnp.minimum(c * n_tiles + t, n_blocks - 1), 0)

    def kernel(pred_ref, target_ref, out_ref):
        c = pl.program_id(0)
        t = pl.program_id(1)

        # Zero this core's resident (8,128) accumulator block on its first tile.
        @pl.when(t == 0)
        def _():
            out_ref[...] = jnp.zeros_like(out_ref)

        # Ragged-tail / duplicate-block mask from the logical (unclamped) global
        # row index.  Pure-VPU cost (iota + cmp + selects) — free filler while
        # the EUP is the binding unit.
        blk = c * n_tiles + t
        row_ids = blk * tile_rows + lax.broadcasted_iota(
            jnp.int32, (tile_rows, LANES), 0)
        valid = row_ids < rows

        # Zero the INPUTS (not just the loss) so no undefined out-of-bounds data
        # ever reaches exp/log; zeroed elements yield exactly 0 loss.
        y = jnp.where(valid, target_ref[...].astype(jnp.float32), 0.0)
        y_hat = jnp.where(valid, pred_ref[...].astype(jnp.float32), 0.0)

        dy = jnp.abs(y - y_hat)
        exp_a = ALPHA - y
        linear = dy >= THETA

        # Select the transcendental ARGUMENT, then one shared exp serves both:
        #   dy <  theta: shared = (dy / omega) ** exp_a   (underflows to 0 at dy=0)
        #   dy >= theta: shared = (theta / eps) ** exp_a
        # TODO(synk): assumes exp_a = alpha - y > 0 (heatmap targets <= alpha);
        # torch.pow's 0 ** (p <= 0) behavior is not modeled.
        log_arg = jnp.log(jnp.maximum(dy, 1e-30)) - _LOG_OMEGA
        shared = jnp.exp(exp_a * jnp.where(linear, _LOG_THETA_OVER_EPS, log_arg))
        log1p_shared = jnp.log1p(shared)            # shared by both branches

        # Linear-region slope A (only consumed where `linear` is true).
        a_coef = _A_SCALE * exp_a * shared * _fast_recip(1.0 + shared)

        # loss1 = omega*log1p(shared)
        # loss2 = A*dy - (theta*A - omega*log1p(shared)) = A*(dy-theta) + omega*log1p(shared)
        loss = OMEGA * log1p_shared + jnp.where(linear, a_coef * (dy - THETA), 0.0)

        # Hierarchical reduction: (tile_rows,128) -> (8,128) partial with pure
        # VPU adds; no cross-lane XLU reduce or scalar store in the hot loop.
        out_ref[...] += jnp.sum(loss.reshape(tile_rows // 8, 8, LANES), axis=0)

    partials = pl.pallas_call(
        kernel,
        out_shape=jax.ShapeDtypeStruct((n_cores * 8, LANES), jnp.float32),
        grid_spec=pltpu.PrefetchScalarGridSpec(
            num_scalar_prefetch=0,
            grid=(n_cores, n_tiles),
            in_specs=[
                pl.BlockSpec((tile_rows, LANES), idx_map),
                pl.BlockSpec((tile_rows, LANES), idx_map),
            ],
            out_specs=pl.BlockSpec((8, LANES), lambda c, t: (c, 0)),
        ),
        compiler_params=pltpu.CompilerParams(
            dimension_semantics=("parallel", "arbitrary"),
            vmem_limit_bytes=32 * 1024 * 1024,
        ),
    )(p2, t2)

    # Tiny final collapse (n_cores * 8 * 128 floats) + true-count mean scaling.
    return jnp.sum(partials) * (1.0 / float(total))


def adaptive_wing_loss_ref(pred, target):
    """Pure-JAX reference mirroring the PyTorch module."""
    y = target.astype(jnp.float32)
    y_hat = pred.astype(jnp.float32)
    dy = jnp.abs(y - y_hat)
    exp_a = ALPHA - y
    loss1 = OMEGA * jnp.log1p(jnp.power(dy / OMEGA, exp_a))
    toe = THETA / EPSILON
    pow_ae = jnp.power(toe, exp_a)
    pow_ae_m1 = jnp.power(toe, exp_a - 1.0)
    A = OMEGA * (1.0 / (1.0 + pow_ae)) * exp_a * pow_ae_m1 * (1.0 / EPSILON)
    C = THETA * A - OMEGA * jnp.log1p(pow_ae)
    loss2 = A * dy - C
    loss = jnp.where(dy < THETA, loss1, loss2)
    return jnp.mean(loss)


if __name__ == "__main__":
    key = jax.random.PRNGKey(0)
    k1, k2 = jax.random.split(key)
    B, N, H = 2, 4, 16
    # Heatmap-like targets in [0, 1]; predictions = target + noise so both
    # branches (|diff| < theta and >= theta) are exercised.
    target = jax.random.uniform(k1, (B, N, H, H), dtype=jnp.float32)
    pred = target + 0.8 * jax.random.normal(k2, (B, N, H, H), dtype=jnp.float32)

    out = adaptive_wing_loss(pred, target)
    out = jax.block_until_ready(out)

    ref = adaptive_wing_loss_ref(pred, target)
    assert jnp.allclose(out, ref, rtol=1e-3, atol=1e-6), (out, ref)

    print("KERNEL_OK")
</pallas_src>

<mosaic_0001>
module attributes {stable_mosaic.version = 11 : i64} {
  func.func @kernel(%arg0: i32, %arg1: i32, %arg2: memref<16x128xf32, #tpu.memory_space<vmem>>, %arg3: memref<16x128xf32, #tpu.memory_space<vmem>>, %arg4: memref<8x128xf32, #tpu.memory_space<vmem>>) attributes {dimension_semantics = [#tpu.dimension_semantics<parallel>, #tpu.dimension_semantics<arbitrary>], iteration_bounds = array<i64: 2, 1>, scalar_prefetch = 0 : i64, scratch_operands = 0 : i64, tpu.core_type = #tpu.core_type<tc>, window_params = [{transform_indices = @transform_0, window_bounds = array<i64: 16, 128>}, {transform_indices = @transform_1, window_bounds = array<i64: 16, 128>}, {transform_indices = @transform_2, window_bounds = array<i64: 8, 128>}]} {
    %c0_i32 = arith.constant 0 : i32
    %0 = arith.cmpi eq, %arg1, %c0_i32 : i32
    %1 = arith.extui %0 : i1 to i32
    %c0_i32_0 = arith.constant 0 : i32
    %2 = arith.cmpi ne, %1, %c0_i32_0 : i32
    scf.if %2 {
      %cst_22 = arith.constant 0.000000e+00 : f32
      %57 = vector.broadcast %cst_22 : f32 to vector<8x128xf32>
      %c0_23 = arith.constant 0 : index
      %c0_24 = arith.constant 0 : index
      %58 = vector.load %arg4[%c0_23, %c0_24] : memref<8x128xf32, #tpu.memory_space<vmem>>, vector<8x128xf32>
      tpu.vector_store %arg4[%c0_23, %c0_24], %57 {strides = array<i32>} : memref<8x128xf32, #tpu.memory_space<vmem>>, vector<8x128xf32>,
    } else {
    }
    %c1_i32 = arith.constant 1 : i32
    %3 = arith.muli %arg0, %c1_i32 : i32
    %4 = arith.addi %3, %arg1 : i32
    %c16_i32 = arith.constant 16 : i32
    %5 = arith.muli %4, %c16_i32 : i32
    %6 = tpu.iota {dimensions = array<i32: 0>} : vector<16x128xi32>
    %7 = vector.broadcast %5 : i32 to vector<16x128xi32>
    %8 = arith.addi %7, %6 : vector<16x128xi32>
    %c16_i32_1 = arith.constant 16 : i32
    %9 = vector.broadcast %c16_i32_1 : i32 to vector<16x128xi32>
    %10 = arith.cmpi slt, %8, %9 : vector<16x128xi32>
    %c0 = arith.constant 0 : index
    %c0_2 = arith.constant 0 : index
    %11 = vector.load %arg3[%c0, %c0_2] : memref<16x128xf32, #tpu.memory_space<vmem>>, vector<16x128xf32>
    %cst = arith.constant 0.000000e+00 : f32
    %12 = vector.broadcast %cst : f32 to vector<16x128xf32>
    %13 = arith.select %10, %11, %12 : vector<16x128xi1>, vector<16x128xf32>
    %c0_3 = arith.constant 0 : index
    %c0_4 = arith.constant 0 : index
    %14 = vector.load %arg2[%c0_3, %c0_4] : memref<16x128xf32, #tpu.memory_space<vmem>>, vector<16x128xf32>
    %cst_5 = arith.constant 0.000000e+00 : f32
    %15 = vector.broadcast %cst_5 : f32 to vector<16x128xf32>
    %16 = arith.select %10, %14, %15 : vector<16x128xi1>, vector<16x128xf32>
    %17 = arith.subf %13, %16 : vector<16x128xf32>
    %18 = math.absf %17 : vector<16x128xf32>
    %cst_6 = arith.constant 2.100000e+00 : f32
    %19 = vector.broadcast %cst_6 : f32 to vector<16x128xf32>
    %20 = arith.subf %19, %13 : vector<16x128xf32>
    %cst_7 = arith.constant 5.000000e-01 : f32
    %21 = vector.broadcast %cst_7 : f32 to vector<16x128xf32>
    %22 = arith.cmpf oge, %18, %21 : vector<16x128xf32>
    %cst_8 = arith.constant 1.000000e-30 : f32
    %23 = vector.broadcast %cst_8 : f32 to vector<16x128xf32>
    %24 = arith.maximumf %18, %23 : vector<16x128xf32>
    %25 = math.log %24 : vector<16x128xf32>
    %cst_9 = arith.constant 2.6390574 : f32
    %26 = vector.broadcast %cst_9 : f32 to vector<16x128xf32>
    %27 = arith.subf %25, %26 : vector<16x128xf32>
    %cst_10 = arith.constant -0.693147182 : f32
    %28 = vector.broadcast %cst_10 : f32 to vector<16x128xf32>
    %29 = arith.select %22, %28, %27 : vector<16x128xi1>, vector<16x128xf32>
    %30 = arith.mulf %20, %29 : vector<16x128xf32>
    %31 = math.exp %30 : vector<16x128xf32>
    %32 = math.log1p %31 : vector<16x128xf32>
    %cst_11 = arith.constant 2.800000e+01 : f32
    %33 = vector.broadcast %cst_11 : f32 to vector<16x128xf32>
    %34 = arith.mulf %33, %20 : vector<16x128xf32>
    %35 = arith.mulf %34, %31 : vector<16x128xf32>
    %cst_12 = arith.constant 1.000000e+00 : f32
    %36 = vector.broadcast %cst_12 : f32 to vector<16x128xf32>
    %37 = arith.addf %36, %31 : vector<16x128xf32>
    %38 = tpu.reciprocal %37 {approx = true} : vector<16x128xf32> -> vector<16x128xf32>
    %39 = arith.mulf %37, %38 : vector<16x128xf32>
    %cst_13 = arith.constant 2.000000e+00 : f32
    %40 = vector.broadcast %cst_13 : f32 to vector<16x128xf32>
    %41 = arith.subf %40, %39 : vector<16x128xf32>
    %42 = arith.mulf %38, %41 : vector<16x128xf32>
    %43 = arith.mulf %35, %42 : vector<16x128xf32>
    %cst_14 = arith.constant 1.400000e+01 : f32
    %44 = vector.broadcast %cst_14 : f32 to vector<16x128xf32>
    %45 = arith.mulf %44, %32 : vector<16x128xf32>
    %cst_15 = arith.constant 5.000000e-01 : f32
    %46 = vector.broadcast %cst_15 : f32 to vector<16x128xf32>
    %47 = arith.subf %18, %46 : vector<16x128xf32>
    %48 = arith.mulf %43, %47 : vector<16x128xf32>
    %cst_16 = arith.constant 0.000000e+00 : f32
    %49 = vector.broadcast %cst_16 : f32 to vector<16x128xf32>
    %50 = arith.select %22, %48, %49 : vector<16x128xi1>, vector<16x128xf32>
    %51 = arith.addf %45, %50 : vector<16x128xf32>
    %c0_17 = arith.constant 0 : index
    %c0_18 = arith.constant 0 : index
    %52 = vector.load %arg4[%c0_17, %c0_18] : memref<8x128xf32, #tpu.memory_space<vmem>>, vector<8x128xf32>
    %53 = vector.shape_cast %51 : vector<16x128xf32> to vector<2x8x128xf32>
    %cst_19 = arith.constant dense<0.000000e+00> : vector<8x128xf32>
    %54 = vector.multi_reduction <add>, %53, %cst_19 [0] : vector<2x8x128xf32> to vector<8x128xf32>
    %55 = arith.addf %52, %54 : vector<8x128xf32>
    %c0_20 = arith.constant 0 : index
    %c0_21 = arith.constant 0 : index
    %56 = vector.load %arg4[%c0_20, %c0_21] : memref<8x128xf32, #tpu.memory_space<vmem>>, vector<8x128xf32>
    tpu.vector_store %arg4[%c0_20, %c0_21], %55 {strides = array<i32>} : memref<8x128xf32, #tpu.memory_space<vmem>>, vector<8x128xf32>,
    return
  }
  func.func @transform_0(%arg0: i32, %arg1: i32) -> (i32, i32) {
    %c1_i32 = arith.constant 1 : i32
    %0 = arith.muli %arg0, %c1_i32 : i32
    %1 = arith.addi %0, %arg1 : i32
    %c0_i32 = arith.constant 0 : i32
    %2 = arith.minsi %1, %c0_i32 : i32
    %c0_i32_0 = arith.constant 0 : i32
    %c0_i32_1 = arith.constant 0 : i32
    return %2, %c0_i32_0 : i32, i32
  }
  func.func @transform_1(%arg0: i32, %arg1: i32) -> (i32, i32) {
    %c1_i32 = arith.constant 1 : i32
    %0 = arith.muli %arg0, %c1_i32 : i32
    %1 = arith.addi %0, %arg1 : i32
    %c0_i32 = arith.constant 0 : i32
    %2 = arith.minsi %1, %c0_i32 : i32
    %c0_i32_0 = arith.constant 0 : i32
    %c0_i32_1 = arith.constant 0 : i32
    return %2, %c0_i32_0 : i32, i32
  }
  func.func @transform_2(%arg0: i32, %arg1: i32) -> (i32, i32) {
    %c0_i32 = arith.constant 0 : i32
    %c0_i32_0 = arith.constant 0 : i32
    return %arg0, %c0_i32 : i32, i32
  }
}

</mosaic_0001>

<bundles_post_ra>
// kernel: tpu_custom_call.1
= control target key start
LH: loop header
LB: loop body
LE: loop exit
PB: predicated region body
PF: predicated region fallthrough
CT: control target
= control target key end

     0   :  { %7 = vsyncpa [#allocation3], 0  ;;  %s1008_s0 = inlined_call_operand.hbm [shape: f32[16,128], index: 0, kind: input, shape index: {}]   ;;  %s1009_s1 = inlined_call_operand.hbm [shape: f32[16,128], index: 1, kind: input, shape index: {}]   ;;  %s1010_s2 = inlined_call_operand.hbm [shape: f32[16,128], index: 2, kind: output, shape index: {}]  }
   0x1   :  { %9 = vsyncpa [#allocation3 + $0x1], 0 }
   0x2   :  { %10 = vsyncpa [#allocation6], 0 }
   0x3   :  { %12 = vsyncpa [#allocation6 + $0x1], 0 }
   0x4   :  { %13 = vsyncpa [#allocation4], 0 }
   0x5   :  { %15 = vsyncpa [#allocation4 + $0x1], 0  ;;  %s774_s9 = smov 0   ;;  %s776_s10 = smov 0  }
   0x6   :  { %s778_s11 = smov 0   ;;  %s780_s12 = smov 0  }
   0x7   :  { %s782_s13 = smov 0   ;;  %s784_s14 = smov 0  }
   0x8   :  { %s786_s15 = smov 0   ;;  %s788_s16 = smov 0  }
   0x9 LB: > { %s450_s17 = sadd.s32 4294967295, %s752_s16   ;;  %s451_s18 = sadd.s32 4294967294, %s752_s16   ;;  %s752_s16 = sphi %s788_s16, %s21_s16   ;;  %s748_s15 = sphi %s786_s15, %s1033_s15   ;;  %s744_s14 = sphi %s784_s14, %s1032_s14   ;;  %s740_s13 = sphi %s782_s13, %s998_s13   ;;  %s736_s12 = sphi %s780_s12, %s1031_s12   ;;  %s732_s11 = sphi %s778_s11, %s1030_s11   ;;  %s728_s10 = sphi %s776_s10, %s1029_s10   ;;  %s724_s9 = sphi %s774_s9, %s1028_s9  }
   0xa   : > { %s33_s19 = sadd.s32 1, %s748_s15  ;;  %p721_p1 = scmp.ne.s32.totalorder %s740_s13, 0 }
   0xb   : > { %p35_p0 = scmp.ge.s32.totalorder %s33_s19, 2  ;;  %p54_p2 = scmp.eq.s32.totalorder %s752_s16, 0 }
   0xc   : > { %p59_p3 = scmp.ne.s32.totalorder %s740_s13, %s736_s12  ;;  %p60_p5 = scmp.eq.s32.totalorder %s450_s17, 0 }
   0xd   : > { %s1035_s19 = smov (%p35_p0, %s33_s19), 0  ;;  %p820_p4 = por %p721_p1, %p54_p2 }
   0xe   : > { %p824_p6 = por %p60_p5, %p59_p3  ;;  %s101_s22 = ssub.s32 %s748_s15, %s1035_s19 }
   0xf   : > { %p102_p7 = scmp.eq.s32.totalorder %s101_s22, 0  ;;  %s104_s23 = sadd.s32 1, %s732_s11 }
  0x10   : > { %s1014_s21 = scalar_select %p824_p6, 1, 0 }
  0x11   : > { %s832_s24 = scalar_select %p102_p7, %s732_s11, %s104_s23  }
  0x12   : > { %p114_p8 = scmp.ne.s32.totalorder %s732_s11, %s728_s10  ;;  %p115_p9 = scmp.eq.s32.totalorder %s450_s17, 1 }
  0x13   : > { %p120_p10 = scmp.ne.s32.totalorder %s728_s10, %s724_s9  ;;  %p121_p11 = scmp.eq.s32.totalorder %s451_s18, 1 }
  0x14   : > { %p838_p12 = por %p115_p9, %p114_p8  ;;  %p492_p1 = scmp.lt.s32.totalorder %s752_s16, 2 }
  0x15   : > { %p843_p0 = por %p121_p11, %p120_p10  ;;  %s754_s27 = smov [#allocation2]  }
  0x16   : > { %s1015_s25 = scalar_select %p838_p12, 1, 0 }
  0x17   : > { %s1016_s26 = scalar_select %p843_p0, 1, 0 }
  0x18   : > { %s155_s28 = sshll.u32 %s754_s27, 4  ;;  %p850_p2 = pnand %p492_p1, %p820_p4  ;;  %s156_s28 = int_to_ptr.vmem [resolvable:$true] %s155_s28 }
  0x19   : > { %s585_s4 = scalar_lea.hbm %s1008_s0, 256 }
  0x1a   : > { %p586_p3 = scmp.ne.s32.totalorder %s1008_s0, %s585_s4  ;;  %p587_p5 = pneg %p850_p2 }
  0x1b   : > { %p592_p8 = scmp.lt.u32.totalorder %s585_s4, %s585_s4  ;;  %p594_p9 = scmp.lt.u32.totalorder %s585_s4, %s1008_s0 }
  0x1c   : > { %p588_p7 = pnand %p587_p5, %p586_p3 }
  0x1d   : > { %p595_p10 = por %p594_p9, %p592_p8 }
  0x1e   : > { %p589_p4 = pneg %p588_p7 }
  0x20   : > { %p596_p11 = pnand %p595_p10, %p589_p4 }
  0x22   : > { %599 = shalt.err (!%p596_p11)
}
  0x23   : > { %s600_s12 = scalar_lea.vmem %s156_s28, 256  ;;  %s607_s17 = scalar_lea.vmem %s156_s28, 512 }
  0x24   : > { %p601_p1 = scmp.ne.s32.totalorder %s156_s28, %s600_s12  ;;  %p608_p12 = scmp.lt.s32.totalorder %s156_s28, %s156_s28 }
  0x25   : > { %p609_p6 = scmp.lt.s32.totalorder %s607_s17, %s600_s12 }
  0x26   : > { %p603_p13 = pnand %p601_p1, %p587_p5 }
  0x27   : > { %p610_p3 = por %p609_p6, %p608_p12 }
  0x28   : > { %p604_p0 = pneg %p603_p13 }
  0x2a   : > { %p611_p7 = pnand %p610_p3, %p604_p0 }
  0x2c   : > { %614 = shalt.err (!%p611_p7)
}
  0x2d   : > { %s755_s18 = smov 128   ;;  %s756_s20 = smov 8  }
  0x2e   : > { %484 = dma.hbm_to_vmem [thread:$0]  (!%p850_p2), %s1008_s0, 256, %s156_s28, [#allocation3], %s755_s18, %s755_s18, %s756_s20  }
  0x2f   : > { %p460_p13 = scmp.ge.s32.totalorder %s752_s16, 1  ;;  %p187_p4 = scmp.lt.s32.totalorder %s752_s16, 3 }
  0x30   : > { %s757_s30 = smov [#allocation5]   ;;  %s615_s6 = scalar_lea.hbm %s1009_s1, 256 }
  0x31   : > { %p881_p8 = pnand %p460_p13, %p187_p4  ;;  %s179_s3 = sshll.u32 %s757_s30, 4  ;;  %s180_s3 = int_to_ptr.vmem [resolvable:$true] %s179_s3 }
  0x32   : > { %p616_p6 = scmp.ne.s32.totalorder %s1009_s1, %s615_s6  ;;  %p622_p9 = scmp.lt.u32.totalorder %s615_s6, %s615_s6 }
  0x33   : > { %s1018_s27 = scalar_select %p881_p8, 1, 0 }
  0x34   : > { %p618_p12 = pnand %p616_p6, %p587_p5  ;;  %p624_p10 = scmp.lt.u32.totalorder %s615_s6, %s1009_s1 }
  0x36   : > { %p619_p0 = pneg %p618_p12  ;;  %p625_p11 = por %p624_p10, %p622_p9 }
  0x38   : > { %p626_p1 = pnand %p625_p11, %p619_p0 }
  0x3a   : > { %629 = shalt.err (!%p626_p1)
}
  0x3b   : > { %s630_s17 = scalar_lea.vmem %s180_s3, 256  ;;  %s637_s22 = scalar_lea.vmem %s180_s3, 512 }
  0x3c   : > { %p631_p3 = scmp.ne.s32.totalorder %s180_s3, %s630_s17  ;;  %p638_p4 = scmp.lt.s32.totalorder %s180_s3, %s180_s3 }
  0x3d   : > { %p639_p8 = scmp.lt.s32.totalorder %s637_s22, %s630_s17 }
  0x3e   : > { %p633_p7 = pnand %p631_p3, %p587_p5 }
  0x3f   : > { %p640_p6 = por %p639_p8, %p638_p4 }
  0x40   : > { %p634_p13 = pneg %p633_p7 }
  0x42   : > { %p641_p12 = pnand %p640_p6, %p634_p13 }
  0x44   : > { %644 = shalt.err (!%p641_p12)
}
  0x45   : > { %487 = dma.hbm_to_vmem [thread:$0]  (!%p850_p2), %s1009_s1, 256, %s180_s3, [#allocation6], %s755_s18, %s755_s18, %s756_s20  }
  0x46   : > { %p1019_p0 = scmp.ne.s32.totalorder %s1018_s27, 0 }
  0x47   : > { %s193_s4 = sand.u32 (!%p1019_p0), 1, %s740_s13   ;;  %p1020_p5 = scmp.ne.s32.totalorder (!%p1019_p0), %s1014_s21, 0 }
  0x48   : > { %191 = sbr.rel (%p1019_p0) target bundleno = 173 (0xad), region = 28  ;;  %s461_s5 = sshll.u32 (!%p1019_p0), %s193_s4, 4 }
  0x49   : > { %s194_s6 = scalar_lea.sflag (!%p1019_p0), [#allocation3], %s193_s4  ;;  %s197_s7 = scalar_lea.vmem (!%p1019_p0), [#allocation2], %s461_s5 }
  0x4f   : > { %710 = dma.done.wait (%p1020_p5), %s194_s6, 256  }
  0x50   : > { %712 = vsyncadd (%p1020_p5), %s194_s6, 4294967040  ;;  %s203_s29 = scalar_lea.sflag [#allocation6], %s193_s4  ;;  %s206_s8 = scalar_lea.vmem [#allocation5], %s461_s5 }
  0x51   : > { %714 = dma.done.wait (%p1020_p5), %s203_s29, 256  }
  0x52   : > { %716 = vsyncadd (%p1020_p5), %s203_s29, 4294967040  ;;  %s464_s18 = sshll.u32 %s744_s14, 4  ;;  %v247_v0 = vlaneseq  ;;  %v255_v6 = vld [vmem:[%s206_s8] sm:$0xff]  ;;  %v256_v7 = vld [vmem:[%s206_s8 + $0x8] sm:$0xff]  ;;  %s229_s21 = sand.u32 1, %s728_s10  }
  0x53   : > { %v250_v1 = vstv %s464_s18  ;;  %v259_v8 = vld [vmem:[%s197_s7] sm:$0xff]  ;;  %v260_v10 = vld [vmem:[%s197_s7 + $0x8] sm:$0xff]  ;;  %s463_s20 = sshll.u32 %s229_s21, 3  ;;  %s470_s27 = sshll.u32 %s744_s14, 7 }
  0x54   : > { %v248_v2 = vshrl.u32 %v247_v0, 7  ;;  %s231_s3 = scalar_lea.vmem [#allocation7], %s463_s20  ;;  %s955_s22 = scalar_lea.hbm %s1010_s2, %s470_s27 }
  0x55   : > { %s349_s28 = sshll.u32 %s231_s3, 4  ;;  %s336_s23 = scalar_lea.sflag [#allocation4], %s229_s21  ;;  %s957_s28 = int_to_ptr.vmem [resolvable:$true] %s349_s28 }
  0x56   : > { %v249_v3 = vadd.s32 8, %v248_v2  ;;  %v251_v4 = vadd.s32 %v250_v1, %v248_v2  ;;  %s645_s30 = scalar_lea.vmem %s957_s28, 128  ;;  %p1025_p8 = scmp.ne.s32.totalorder %s1015_s25, 0 }
  0x57   : > { %p646_p2 = scmp.ne.s32.totalorder %s957_s28, %s645_s30  ;;  %s758_s14 = smov [#allocation7]  }
  0x58   : > { %v252_v5 = vadd.s32 %v250_v1, %v249_v3  ;;  %vm253_vm0 = vcmp.lt.s32.totalorder %v251_v4, 16  ;;  %s649_s4 = sshll.u32 %s758_s14, 4  ;;  %s650_s4 = int_to_ptr.vmem [resolvable:$false] %s649_s4 }
  0x59   : > { %v257_v9 = vsel %vm253_vm0, %v255_v6, 0.0  ;;  %v261_v11 = vsel %vm253_vm0, %v259_v8, 0.0  ;;  %p647_p9 = pnand %p646_p2, %p1025_p8  ;;  %s651_s5 = scalar_lea.vmem %s650_s4, 256 }
  0x5a   : > { %vm254_vm1 = vcmp.lt.s32.totalorder %v252_v5, 16  ;;  %v263_v14 = vsub.f32 %v257_v9, %v261_v11  ;;  %v267_v23 = vsub.f32 2.1, %v257_v9  ;;  %p652_p11 = scmp.lt.s32.totalorder %s957_s28, %s650_s4  ;;  %p653_p1 = scmp.lt.s32.totalorder %s651_s5, %s645_s30 }
  0x5b   : > { %v258_v12 = vsel %vm254_vm1, %v256_v7, 0.0  ;;  %v262_v13 = vsel %vm254_vm1, %v260_v10, 0.0  ;;  %p648_p10 = pneg %p647_p9 }
  0x5c   : > { %v264_v15 = vsub.f32 %v258_v12, %v262_v13  ;;  %v920_v16 = vand.u32 2147483647, %v263_v14  ;;  %v268_v25 = vsub.f32 2.1, %v258_v12  ;;  %v305_v46 = vmul.f32 28.0, %v267_v23  ;;  %p654_p3 = por %p653_p1, %p652_p11 }
  0x5e   : > { %v922_v17 = vand.u32 2147483647, %v264_v15  ;;  %v271_v18 = vmax.f32 %v920_v16, 1e-30  ;;  %vm269_vm2 = vcmp.ge.f32.partialorder %v920_v16, 0.5  ;;  %v306_v48 = vmul.f32 28.0, %v268_v25  ;;  %p655_p7 = pnand %p654_p3, %p648_p10 }
  0x5f   : > { %v467_v0 = vadd.f32 -0.5, %v920_v16 }
  0x60   : > { %v272_v19 = vmax.f32 %v922_v17, 1e-30  ;;  %569 = vlog2.f32 %v271_v18  ;;  %vm270_vm3 = vcmp.ge.f32.partialorder %v922_v17, 0.5  ;;  %v468_v3 = vadd.f32 -0.5, %v922_v17 }
  0x62   : > { %571 = vlog2.f32 %v272_v19 }
  0x6a   : > { %v570_v20 = vpop.eup %569 }
  0x6b   : > { %v274_v22 = vmul.f32 0.6931472, %v570_v20 }
  0x6c   : > { %v572_v21 = vpop.eup %571 }
  0x6d   : > { %v276_v24 = vmul.f32 0.6931472, %v572_v21  ;;  %v465_v26 = vadd.f32 -2.6390574, %v274_v22 }
  0x6f   : > { %v466_v27 = vadd.f32 -2.6390574, %v276_v24  ;;  %v279_v28 = vsel %vm269_vm2, -0.6931472, %v465_v26 }
  0x70   : > { %v281_v30 = vmul.f32 %v279_v28, %v267_v23 }
  0x71   : > { %v280_v29 = vsel %vm270_vm3, -0.6931472, %v466_v27 }
  0x72   : > { %v282_v31 = vmul.f32 %v280_v29, %v268_v25  ;;  %v283_v32 = vmul.f32 1.442695, %v281_v30 }
  0x74   : > { %v285_v33 = vmul.f32 1.442695, %v282_v31  ;;  %573 = vpow2.f32 %v283_v32 }
  0x76   : > { %575 = vpow2.f32 %v285_v33 }
  0x7e   : > { %v574_v34 = vpop.eup %573 }
  0x7f   : > { %v287_v36 = vadd.f32 1.0, %v574_v34  ;;  %v290_v38 = vmul.f32 -0.5, %v574_v34  ;;  %v293_v42 = vand.u32 2147483647, %v574_v34  ;;  %v307_v58 = vmul.f32 %v574_v34, %v305_v46 }
  0x80   : > { %v576_v35 = vpop.eup %575 }
  0x81   : > { %v296_v37 = vadd.f32 1.0, %v576_v35  ;;  %577 = vlog2.f32 %v287_v36  ;;  %v299_v39 = vmul.f32 -0.5, %v576_v35  ;;  %v291_v40 = vadd.f32 1.0, %v290_v38 }
  0x82   : > { %v302_v45 = vand.u32 2147483647, %v576_v35  ;;  %vm932_vm4 = vcmp.lt.f32.partialorder %v293_v42, 0.0004427343  ;;  %v308_v60 = vmul.f32 %v576_v35, %v306_v48 }
  0x83   : > { %579 = vlog2.f32 %v296_v37  ;;  %v300_v43 = vadd.f32 1.0, %v299_v39  ;;  %v292_v51 = vmul.f32 %v574_v34, %v291_v40 }
  0x84   : > { %581 = vrcp.f32 %v287_v36  ;;  %vm936_vm5 = vcmp.lt.f32.partialorder %v302_v45, 0.0004427343 }
  0x85   : > { %583 = vrcp.f32 %v296_v37  ;;  %v301_v55 = vmul.f32 %v576_v35, %v300_v43 }
  0x8b   : > { %v578_v41 = vpop.eup %577 }
  0x8c   : > { %v289_v50 = vmul.f32 0.6931472, %v578_v41 }
  0x8d   : > { %v580_v44 = vpop.eup %579 }
  0x8e   : > { %v582_v47 = vpop.eup %581  ;;  %v298_v54 = vmul.f32 0.6931472, %v580_v44  ;;  %v295_v62 = vsel %vm932_vm4, %v292_v51, %v289_v50 }
  0x8f   : > { %v584_v49 = vpop.eup %583  ;;  %v313_v52 = vmul.f32 %v582_v47, %v287_v36  ;;  %v321_v6 = vmul.f32 14.0, %v295_v62 }
  0x90   : > { %v314_v56 = vmul.f32 %v584_v49, %v296_v37  ;;  %v304_v1 = vsel %vm936_vm5, %v301_v55, %v298_v54 }
  0x91   : > { %v315_v59 = vsub.f32 2.0, %v313_v52  ;;  %v322_v7 = vmul.f32 14.0, %v304_v1 }
  0x92   : > { %v316_v61 = vsub.f32 2.0, %v314_v56 }
  0x93   : > { %v317_v63 = vmul.f32 %v582_v47, %v315_v59 }
  0x94   : > { %v318_v2 = vmul.f32 %v584_v49, %v316_v61 }
  0x95   : > { %v319_v4 = vmul.f32 %v317_v63, %v307_v58 }
  0x96   : > { %v320_v5 = vmul.f32 %v318_v2, %v308_v60 }
  0x97   : > { %v325_v8 = vmul.f32 %v467_v0, %v319_v4 }
  0x98   : > { %v326_v9 = vmul.f32 %v468_v3, %v320_v5 }
  0x99   : > { %v327_v10 = vsel %vm269_vm2, %v325_v8, 0.0 }
  0x9a   : > { %v328_v11 = vsel %vm270_vm3, %v326_v9, 0.0  ;;  %v329_v12 = vadd.f32 %v327_v10, %v321_v6 }
  0x9b   : > { %v330_v13 = vadd.f32 %v328_v11, %v322_v7 }
  0x9d   : > { %v332_v14 = vadd.f32 %v330_v13, %v329_v12 }
  0x9f   : > { %334 = vst [vmem:[%s231_s3] sm:$0xff] %v332_v14 }
  0xa0   : > { %658 = shalt.err (!%p655_p7)
}
  0xa1   : > { %s659_s6 = scalar_lea.hbm %s955_s22, 128  ;;  %s663_s8 = scalar_lea.hbm %s1010_s2, 256 }
  0xa2   : > { %p660_p13 = scmp.ne.s32.totalorder %s955_s22, %s659_s6  ;;  %p664_p12 = scmp.lt.u32.totalorder %s955_s22, %s1010_s2 }
  0xa3   : > { %p665_p0 = scmp.lt.u32.totalorder %s663_s8, %s659_s6  ;;  %p667_p2 = scmp.lt.u32.totalorder %s659_s6, %s955_s22 }
  0xa4   : > { %p661_p4 = pnand %p660_p13, %p1025_p8 }
  0xa5   : > { %p666_p5 = por %p665_p0, %p664_p12 }
  0xa6   : > { %p662_p6 = pneg %p661_p4 }
  0xa7   : > { %p668_p9 = por %p667_p2, %p666_p5 }
  0xa9   : > { %p669_p10 = pnand %p668_p9, %p662_p6 }
  0xab   : > { %672 = shalt.err (!%p669_p10)
}
  0xac   : > { %479 = dma.vmem_to_hbm [thread:$0]  (%p1025_p8), %s957_s28, 128, %s955_s22, %s336_s23  }
  0xad PF: > { %s361_s20 = sand.u32 1, %s724_s9   ;;  %p1026_p11 = scmp.ne.s32.totalorder %s1016_s26, 0 }
  0xae   : > { %p1027_p1 = scmp.ge.s32.totalorder %s752_s16, 2  ;;  %s362_s27 = scalar_lea.sflag [#allocation4], %s361_s20 }
  0xb0   : > { %p489_p3 = pnand %p1027_p1, %p1026_p11 }
  0xb2   : > { %718 = dma.done.wait (!%p489_p3), %s362_s27, 128  }
  0xb3   : > { %720 = vsyncadd (!%p489_p3), %s362_s27, 4294967168  ;;  %s21_s16 = sadd.s32 1, %s752_s16   ;;  %s1028_s9 = smov %s728_s10 }
  0xb4   : > { %p18_p7 = scmp.ge.s32.totalorder %s21_s16, 4   ;;  %s1029_s10 = smov %s732_s11 }
  0xb5   : > { %s1030_s11 = smov %s832_s24  ;;  %s1031_s12 = smov %s740_s13 }
  0xb6   : > { %s998_s13 = smov 0   ;;  %s1032_s14 = smov %s748_s15 }
  0xb7   : > { %s1033_s15 = smov %s1035_s19  ;;  %20 = sbr.rel (!%p18_p7) target bundleno = 9 (0x9), region = 90 }
  0xbe   :  { %367 = vsyncpa [#allocation3], 1 }
  0xbf   :  { %369 = vsyncpa [#allocation3 + $0x1], 1 }
  0xc0   :  { %370 = vsyncpa [#allocation6], 1 }
  0xc1   :  { %372 = vsyncpa [#allocation6 + $0x1], 1 }
  0xc2   :  { %373 = vsyncpa [#allocation4], 1 }
  0xc3   :  { %375 = vsyncpa [#allocation4 + $0x1], 1 }

</bundles_post_ra>
